<compile_context>
chip_gen: v6e
topology: v6e:2x2x1
jax: 0.10.0
libtpu: 0.0.40
codegen_flags: <defaults>
</compile_context>

<pallas_src>
import jax
import jax.numpy as jnp
from jax.experimental import pallas as pl
from jax.experimental.pallas import tpu as pltpu

_LANES = 128


def _sinlu_kernel(ab_ref, x_ref, o_ref):
    # ab_ref lives in SMEM (scalar prefetch); read once into scalar locals.
    a = ab_ref[0]
    b = ab_ref[1]
    x = x_ref[...]                                   # (row_block, 128) f32
    # sigmoid(x) = 1 / (1 + exp(-x)); approx reciprocal runs on the EUP slot.
    sig = pl.reciprocal(1.0 + jnp.exp(-x), approx=True)
    o_ref[...] = (sig * (x + a * jnp.sin(b * x))).astype(o_ref.dtype)


def _choose_row_block(rows: int) -> int:
    # Biggest power-of-two row block that does not exceed the problem size.
    # Cap at 2048 rows (1 MiB per f32 buffer): near the HBM-roofline plateau,
    # and in+out double-buffered is only ~4 MiB of VMEM.  Minimum 8 rows for
    # the (8, 128) sublane tile.
    for cand in (2048, 1024, 512, 256, 128, 64, 32, 16, 8):
        if rows >= cand:
            return cand
    return 8


def sinlu(x, a, b):
    """Pallas SinLU: sigmoid(x) * (x + a*sin(b*x)), elementwise over any shape."""
    orig_shape = x.shape
    orig_dtype = x.dtype
    xf = jnp.ravel(x).astype(jnp.float32)
    total = xf.shape[0]

    rows = pl.cdiv(total, _LANES)
    row_block = _choose_row_block(rows)
    rows_padded = pl.cdiv(rows, row_block) * row_block
    pad = rows_padded * _LANES - total
    if pad:
        xf = jnp.pad(xf, (0, pad))
    x2 = xf.reshape(rows_padded, _LANES)             # lane-dense 2D slab

    ab = jnp.stack([jnp.asarray(a, jnp.float32).reshape(()),
                    jnp.asarray(b, jnp.float32).reshape(())])  # (2,) -> SMEM

    n_elems = rows_padded * _LANES
    grid = (rows_padded // row_block,)
    out2 = pl.pallas_call(
        _sinlu_kernel,
        out_shape=jax.ShapeDtypeStruct((rows_padded, _LANES), jnp.float32),
        grid_spec=pltpu.PrefetchScalarGridSpec(
            num_scalar_prefetch=1,
            grid=grid,
            in_specs=[pl.BlockSpec((row_block, _LANES), lambda i, ab: (i, 0))],
            out_specs=pl.BlockSpec((row_block, _LANES), lambda i, ab: (i, 0)),
        ),
        compiler_params=pltpu.CompilerParams(
            dimension_semantics=("parallel",),       # shard row blocks across TCs on v7x
        ),
        cost_estimate=pl.CostEstimate(
            flops=6 * n_elems,                       # mul/add/select-style VPU work
            transcendentals=2 * n_elems,             # exp + sin per element
            bytes_accessed=8 * n_elems,              # f32 in + f32 out
        ),
    )(ab, x2)

    out = out2.reshape(-1)[:total].reshape(orig_shape)
    return out.astype(orig_dtype)


def _sinlu_ref(x, a, b):
    return jax.nn.sigmoid(x) * (x + a * jnp.sin(b * x))


if __name__ == "__main__":
    key = jax.random.PRNGKey(0)
    x = jax.random.normal(key, (2, 4, 16, 16), jnp.float32)   # NCHW like PyTorch

    # Parameters as in the module init: a = ones(1), b = ones(1).
    a = jnp.ones((1,), jnp.float32)
    b = jnp.ones((1,), jnp.float32)
    out = jax.block_until_ready(sinlu(x, a, b))
    ref = _sinlu_ref(x, a[0], b[0])
    assert out.shape == x.shape and out.dtype == jnp.float32
    assert bool(jnp.all(jnp.isfinite(out)))
    assert bool(jnp.allclose(out, ref, rtol=1e-2, atol=1e-2))

    # Non-trivial learned scalars (parameters are trainable in the module).
    a2 = jnp.asarray(1.5, jnp.float32)
    b2 = jnp.asarray(0.7, jnp.float32)
    out2 = jax.block_until_ready(sinlu(x, a2, b2))
    ref2 = _sinlu_ref(x, a2, b2)
    assert bool(jnp.allclose(out2, ref2, rtol=1e-2, atol=1e-2))

    # Larger, non-multiple-of-(8*128) size exercises padding + multi-step grid.
    x3 = jax.random.normal(jax.random.PRNGKey(1), (3, 5, 17, 31), jnp.float32)
    out3 = jax.block_until_ready(sinlu(x3, a2, b2))
    ref3 = _sinlu_ref(x3, a2, b2)
    assert out3.shape == x3.shape
    assert bool(jnp.allclose(out3, ref3, rtol=1e-2, atol=1e-2))

    print("KERNEL_OK")
</pallas_src>

<mosaic_0001>
module attributes {stable_mosaic.version = 11 : i64} {
  func.func @_sinlu_kernel(%arg0: i32, %arg1: memref<2xf32, #tpu.memory_space<smem>>, %arg2: memref<16x128xf32, #tpu.memory_space<vmem>>, %arg3: memref<16x128xf32, #tpu.memory_space<vmem>>) attributes {dimension_semantics = [#tpu.dimension_semantics<parallel>], iteration_bounds = array<i64: 1>, scalar_prefetch = 1 : i64, scratch_operands = 0 : i64, tpu.core_type = #tpu.core_type<tc>, window_params = [{transform_indices = @transform_0, window_bounds = array<i64: 16, 128>}, {transform_indices = @transform_1, window_bounds = array<i64: 16, 128>}]} {
    %c0 = arith.constant 0 : index
    %0 = memref.load %arg1[%c0] : memref<2xf32, #tpu.memory_space<smem>>
    %c1 = arith.constant 1 : index
    %1 = memref.load %arg1[%c1] : memref<2xf32, #tpu.memory_space<smem>>
    %c0_0 = arith.constant 0 : index
    %c0_1 = arith.constant 0 : index
    %2 = vector.load %arg2[%c0_0, %c0_1] : memref<16x128xf32, #tpu.memory_space<vmem>>, vector<16x128xf32>
    %cst = arith.constant 0.000000e+00 : f32
    %3 = vector.broadcast %cst : f32 to vector<16x128xf32>
    %4 = arith.subf %3, %2 : vector<16x128xf32>
    %5 = math.exp %4 : vector<16x128xf32>
    %cst_2 = arith.constant 1.000000e+00 : f32
    %6 = vector.broadcast %cst_2 : f32 to vector<16x128xf32>
    %7 = arith.addf %6, %5 : vector<16x128xf32>
    %8 = tpu.reciprocal %7 {approx = true} : vector<16x128xf32> -> vector<16x128xf32>
    %9 = vector.broadcast %1 : f32 to vector<16x128xf32>
    %10 = arith.mulf %9, %2 : vector<16x128xf32>
    %11 = math.sin %10 : vector<16x128xf32>
    %12 = vector.broadcast %0 : f32 to vector<16x128xf32>
    %13 = arith.mulf %12, %11 : vector<16x128xf32>
    %14 = arith.addf %2, %13 : vector<16x128xf32>
    %15 = arith.mulf %8, %14 : vector<16x128xf32>
    %c0_3 = arith.constant 0 : index
    %c0_4 = arith.constant 0 : index
    %16 = vector.load %arg3[%c0_3, %c0_4] : memref<16x128xf32, #tpu.memory_space<vmem>>, vector<16x128xf32>
    tpu.vector_store %arg3[%c0_3, %c0_4], %15 {strides = array<i32>} : memref<16x128xf32, #tpu.memory_space<vmem>>, vector<16x128xf32>,
    return
  }
  func.func @transform_0(%arg0: i32, %arg1: memref<2xf32, #tpu.memory_space<smem>>) -> (i32, i32) {
    %c0_i32 = arith.constant 0 : i32
    %c0_i32_0 = arith.constant 0 : i32
    return %arg0, %c0_i32 : i32, i32
  }
  func.func @transform_1(%arg0: i32, %arg1: memref<2xf32, #tpu.memory_space<smem>>) -> (i32, i32) {
    %c0_i32 = arith.constant 0 : i32
    %c0_i32_0 = arith.constant 0 : i32
    return %arg0, %c0_i32 : i32, i32
  }
}

</mosaic_0001>

<bundles_post_ra>
// kernel: tpu_custom_call.1
= control target key start
LH: loop header
LB: loop body
LE: loop exit
PB: predicated region body
PF: predicated region fallthrough
CT: control target
= control target key end

     0   :  { %s377_s9 = smov [#allocation3]   ;;  %s505_s0 = inlined_call_operand.hbm [shape: f32[2], index: 0, kind: input, shape index: {}]   ;;  %s506_s1 = inlined_call_operand.hbm [shape: f32[16,128], index: 1, kind: input, shape index: {}]   ;;  %s507_s2 = inlined_call_operand.hbm [shape: f32[16,128], index: 2, kind: output, shape index: {}]  }
   0x1   :  { %8 = dma.hbm_to_smem %s505_s0, 16, %s377_s9, [#allocation2] }
   0x2   :  { %371 = dma.done.wait [#allocation2], 16 }
   0x3   :  { %372 = vsyncadd [#allocation2], 4294967280 }
   0x4   :  { %10 = sfence }
   0x5   :  { %11 = vsyncpa [#allocation5], 0 }
   0x6   :  { %12 = vsyncpa [#allocation6], 0  ;;  %s378_s12 = smov [#allocation4]  }
   0x7   :  { %s18_s13 = sshll.u32 %s378_s12, 4  ;;  %s19_s13 = int_to_ptr.vmem [resolvable:$true] %s18_s13 }
   0x8   :  { %s339_s14 = scalar_lea.vmem %s19_s13, 256  ;;  %p344_p1 = scmp.lt.s32.totalorder %s19_s13, %s19_s13 }
   0x9   :  { %p340_p0 = scmp.ne.s32.totalorder %s19_s13, %s339_s14  ;;  %p345_p2 = scmp.lt.s32.totalorder %s339_s14, %s339_s14 }
   0xb   :  { %p346_p3 = por %p345_p2, %p344_p1 }
   0xd   :  { %p347_p4 = pnand %p346_p3, %p340_p0 }
   0xf   :  { %350 = shalt.err (!%p347_p4)
}
  0x10   :  { %s379_s15 = smov 128   ;;  %s380_s16 = smov 8  }
  0x11   :  { %24 = dma.hbm_to_vmem [thread:$0]  %s506_s1, 256, %s19_s13, [#allocation5], %s379_s15, %s379_s15, %s380_s16  }
  0x12   :  { %373 = dma.done.wait [#allocation5], 256  }
  0x13   :  { %374 = vsyncadd [#allocation5], 4294967040  ;;  %s279_s18 = sld [smem:[#allocation3 + $0x1]]  ;;  %v412_v0 = vld [vmem:[#allocation4] sm:$0xff]  ;;  %v414_v1 = vld [vmem:[#allocation4 + $0x8] sm:$0xff]  ;;  %s387_s19 = smov [#allocation7]  }
  0x14   :  { %v381_v23 = vmov 683565275   ;;  %v382_v25 = vmov 2475754826   ;;  %v383_v27 = vmov 2131351028  }
  0x15   :  { %v384_v29 = vmov 2102212464   ;;  %v385_v31 = vmov 920167782   ;;  %v386_v40 = vmov 1326507024  }
  0x16   :  { %s486_s1 = sld [smem:[#allocation3]]  ;;  %s267_s20 = sshll.u32 %s387_s19, 4  ;;  %s268_s20 = int_to_ptr.vmem [resolvable:$true] %s267_s20 }
  0x17   :  { %s351_s21 = scalar_lea.vmem %s268_s20, 256  ;;  %p356_p6 = scmp.lt.s32.totalorder %s268_s20, %s268_s20 }
  0x18   :  { %p352_p5 = scmp.ne.s32.totalorder %s268_s20, %s351_s21  ;;  %p357_p7 = scmp.lt.s32.totalorder %s351_s21, %s351_s21 }
  0x19   :  { %v42_v2 = vstv %s279_s18 }
  0x1a   :  { %v417_v3 = vmul.f32 %v42_v2, %v412_v0  ;;  %v420_v4 = vmul.f32 %v42_v2, %v414_v1  ;;  %p358_p8 = por %p357_p7, %p356_p6 }
  0x1c   :  { %v48_v5 = vand.u32 2139095040, %v417_v3  ;;  %v45_v6 = vand.u32 2147483647, %v417_v3  ;;  %v152_v7 = vand.u32 2139095040, %v420_v4  ;;  %v149_v12 = vand.u32 2147483647, %v420_v4  ;;  %p359_p9 = pnand %p358_p8, %p352_p5 }
  0x1d   :  { %vm47_vm14 = vcmp.lt.s32.totalorder %v417_v3, 0 }
  0x1e   :  { %v49_v8 = vshrl.u32 %v48_v5, 23  ;;  %v153_v9 = vshrl.u32 %v152_v7, 23  ;;  %v52_v11 = vand.u32 8388607, %v45_v6  ;;  %v430_v18 = vand.u32 8388607, %v149_v12 }
  0x1f   :  { %vm469_vm15 = vcmp.le.f32.partialorder %v45_v6, 0.7853982 }
  0x20   :  { %v280_v10 = vadd.s32 4294967169, %v49_v8  ;;  %v284_v13 = vadd.s32 4294967169, %v153_v9  ;;  %v53_v16 = vor.u32 8388608, %v52_v11  ;;  %v157_v34 = vor.u32 8388608, %v430_v18 }
  0x22   :  { %v55_v14 = vadd.s32 1, %v280_v10  ;;  %v159_v15 = vadd.s32 1, %v284_v13  ;;  %v432_v33 = vshll.u32 %v53_v16, 8 }
  0x24   :  { %vm56_vm0 = vcmp.gt.s32.totalorder %v55_v14, 0  ;;  %vm160_vm1 = vcmp.gt.s32.totalorder %v159_v15, 0 }
  0x25   :  { %v57_v17 = vsel %vm56_vm0, %v55_v14, 0  ;;  %v161_v21 = vsel %vm160_vm1, %v159_v15, 0  ;;  %vm151_vm0 = vcmp.lt.s32.totalorder %v420_v4, 0  ;;  %vm482_vm1 = vcmp.le.f32.partialorder %v149_v12, 0.7853982 }
  0x26   :  { %v59_v19 = vand.u32 31, %v57_v17  ;;  %v58_v20 = vshrl.u32 %v57_v17, 5  ;;  %v163_v42 = vand.u32 31, %v161_v21  ;;  %v162_v55 = vshrl.u32 %v161_v21, 5 }
  0x28   :  { %v60_v22 = vsub.s32 32, %v59_v19  ;;  %v62_v24 = vshll.u32 %v381_v23, %v59_v19  ;;  %v65_v26 = vshll.u32 %v382_v25, %v59_v19  ;;  %v68_v28 = vshll.u32 %v383_v27, %v59_v19 }
  0x29   :  { %v71_v30 = vshll.u32 %v384_v29, %v59_v19  ;;  %v74_v32 = vshll.u32 %v385_v31, %v59_v19  ;;  %vm77_vm2 = vcmp.lt.s32.totalorder %v58_v20, 1  ;;  %vm80_vm3 = vcmp.lt.s32.totalorder %v58_v20, 4 }
  0x2a   :  { %v61_v35 = vshrl.u32 %v381_v23, %v60_v22  ;;  %v63_v36 = vshrl.u32 %v382_v25, %v60_v22  ;;  %v66_v37 = vshrl.u32 %v383_v27, %v60_v22  ;;  %v69_v38 = vshrl.u32 %v384_v29, %v60_v22 }
  0x2b   :  { %v72_v39 = vshrl.u32 %v385_v31, %v60_v22  ;;  %v75_v41 = vshrl.u32 %v386_v40, %v60_v22  ;;  %vm78_vm4 = vcmp.lt.s32.totalorder %v58_v20, 2  ;;  %vm79_vm5 = vcmp.lt.s32.totalorder %v58_v20, 3 }
  0x2c   :  { %v64_v43 = vor.u32 %v63_v36, %v62_v24  ;;  %v67_v44 = vor.u32 %v66_v37, %v65_v26  ;;  %v70_v45 = vor.u32 %v69_v38, %v68_v28  ;;  %v164_v59 = vsub.s32 32, %v163_v42 }
  0x2d   :  { %v73_v46 = vor.u32 %v72_v39, %v71_v30  ;;  %v76_v47 = vor.u32 %v75_v41, %v74_v32  ;;  %v166_v63 = vshll.u32 %v381_v23, %v163_v42  ;;  %v169_v11 = vshll.u32 %v382_v25, %v163_v42 }
  0x2e   :  { %v81_v48 = vsel %vm77_vm2, %v61_v35, %v64_v43  ;;  %v82_v49 = vsel %vm80_vm3, %v70_v45, 2102212464  ;;  %v85_v50 = vsel %vm77_vm2, %v64_v43, %v67_v44  ;;  %v89_v51 = vsel %vm77_vm2, %v67_v44, %v70_v45 }
  0x2f   :  { %v83_v52 = vsel %vm79_vm5, %v67_v44, %v82_v49  ;;  %v86_v53 = vsel %vm80_vm3, %v73_v46, 920167782  ;;  %v90_v54 = vsel %vm80_vm3, %v76_v47, 1326507024  ;;  %v165_v9 = vshrl.u32 %v381_v23, %v164_v59 }
  0x30   :  { %v84_v56 = vsel %vm78_vm4, %v81_v48, %v83_v52  ;;  %v87_v57 = vsel %vm79_vm5, %v70_v45, %v86_v53  ;;  %v91_v58 = vsel %vm79_vm5, %v73_v46, %v90_v54  ;;  %v167_v10 = vshrl.u32 %v382_v25, %v164_v59 }
  0x31   :  { %v88_v60 = vsel %vm78_vm4, %v85_v50, %v87_v57  ;;  %v92_v61 = vsel %vm78_vm4, %v89_v51, %v91_v58  ;;  %v100_v62 = vmul.u32 %v432_v33, %v84_v56  ;;  %v170_v13 = vshrl.u32 %v383_v27, %v164_v59 }
  0x32   :  { %v437_v2 = vmul.u32.u64.low %v432_v33, %v92_v61  ;;  %v438_v5 = vmul.u32.u64.high %v432_v33, %v92_v61, %v437_v2  ;;  %v441_v7 = vmul.u32.u64.low %v432_v33, %v88_v60  ;;  %v442_v8 = vmul.u32.u64.high %v432_v33, %v88_v60, %v441_v7 }
  0x33   :  { %v172_v14 = vshll.u32 %v383_v27, %v163_v42  ;;  %v173_v15 = vshrl.u32 %v384_v29, %v164_v59  ;;  %v175_v16 = vshll.u32 %v384_v29, %v163_v42  ;;  %v176_v17 = vshrl.u32 %v385_v31, %v164_v59 }
  0x34   :  { %v168_v18 = vor.u32 %v167_v10, %v166_v63  ;;  %v171_v19 = vor.u32 %v170_v13, %v169_v11  ;;  %v178_v20 = vshll.u32 %v385_v31, %v163_v42  ;;  %v179_v21 = vshrl.u32 %v386_v40, %v164_v59 }
  0x35   :  { %vm102_vm6 = vc.u32 %v438_v5, %v441_v7  ;;  %v103_v22 = vadd.s32 1, %v442_v8  ;;  %v174_v24 = vor.u32 %v173_v15, %v172_v14  ;;  %v197_v26 = vshll.u32 %v157_v34, 8 }
  0x36   :  { %v177_v28 = vor.u32 %v176_v17, %v175_v16  ;;  %v180_v30 = vor.u32 %v179_v21, %v178_v20  ;;  %vm181_vm7 = vcmp.lt.s32.totalorder %v162_v55, 1  ;;  %vm182_vm8 = vcmp.lt.s32.totalorder %v162_v55, 2 }
  0x37   :  { %v104_v23 = vsel %vm102_vm6, %v103_v22, %v442_v8  ;;  %vm183_vm9 = vcmp.lt.s32.totalorder %v162_v55, 3  ;;  %vm184_vm10 = vcmp.lt.s32.totalorder %v162_v55, 4  ;;  %v185_v25 = vsel %vm181_vm7, %v165_v9, %v168_v18 }
  0x38   :  { %v105_v27 = vadd.s32 %v104_v23, %v100_v62  ;;  %v186_v29 = vsel %vm184_vm10, %v174_v24, 2102212464  ;;  %v189_v32 = vsel %vm181_vm7, %v168_v18, %v171_v19  ;;  %v190_v31 = vsel %vm184_vm10, %v177_v28, 920167782 }
  0x39   :  { %v187_v33 = vsel %vm183_vm9, %v171_v19, %v186_v29  ;;  %v191_v35 = vsel %vm183_vm9, %v174_v24, %v190_v31  ;;  %v193_v36 = vsel %vm181_vm7, %v171_v19, %v174_v24  ;;  %v194_v37 = vsel %vm184_vm10, %v180_v30, 1326507024 }
  0x3a   :  { %v106_v38 = vadd.s32 536870912, %v105_v27  ;;  %v192_v34 = vsel %vm182_vm8, %v189_v32, %v191_v35  ;;  %v195_v39 = vsel %vm183_vm9, %v177_v28, %v194_v37  ;;  %v188_v40 = vsel %vm182_vm8, %v185_v25, %v187_v33 }
  0x3b   :  { %v196_v41 = vsel %vm182_vm8, %v193_v36, %v195_v39  ;;  %v450_v42 = vmul.u32.u64.low %v197_v26, %v192_v34  ;;  %v451_v43 = vmul.u32.u64.high %v197_v26, %v192_v34, %v450_v42  ;;  %v204_v48 = vmul.u32 %v197_v26, %v188_v40 }
  0x3c   :  { %v107_v44 = vshrl.u32 %v106_v38, 30  ;;  %v453_v45 = vmul.u32.u64.low %v197_v26, %v196_v41  ;;  %v454_v46 = vmul.u32.u64.high %v197_v26, %v196_v41, %v453_v45  ;;  %v32_v58 = vsub.f32 0.0, %v412_v0 }
  0x3d   :  { %v207_v49 = vadd.s32 1, %v451_v43  ;;  %v101_v61 = vadd.s32 %v441_v7, %v438_v5  ;;  %v33_v21 = vsub.f32 0.0, %v414_v1  ;;  %vm137_vm5 = vweird.f32 %v417_v3 }
  0x3e   :  { %v108_v47 = vshll.u32 %v107_v44, 30  ;;  %vm206_vm11 = vc.u32 %v454_v46, %v450_v42  ;;  %v34_v2 = vmul.f32 1.442695, %v32_v58  ;;  %v205_v22 = vadd.s32 %v450_v42, %v454_v46 }
  0x3f   :  { %v208_v51 = vsel %vm206_vm11, %v207_v49, %v451_v43  ;;  %v36_v26 = vmul.f32 1.442695, %v33_v21  ;;  %v131_v30 = vsub.s32 4, %v107_v44  ;;  %vm241_vm9 = vweird.f32 %v420_v4 }
  0x40   :  { %v109_v50 = vsub.s32 %v105_v27, %v108_v47  ;;  %v209_v53 = vadd.s32 %v208_v51, %v204_v48  ;;  %307 = vpow2.f32 %v34_v2 }
  0x41   :  { %309 = vpow2.f32 %v36_v26  ;;  %v132_v36 = vsel %vm47_vm14, %v131_v30, %v107_v44 }
  0x42   :  { %v111_v52 = vsub.s32 0, %v109_v50  ;;  %v210_v55 = vadd.s32 536870912, %v209_v53  ;;  %v134_v41 = vsel %vm469_vm15, 0, %v132_v36 }
  0x43   :  { %v138_v45 = vadd.s32 3, %v134_v41 }
  0x44   :  { %v281_v54 = vmin.u32 %v111_v52, %v109_v50  ;;  %v459_v57 = vshrl.u32 %v210_v55, 30 }
  0x45   :  { %v139_v49 = vand.u32 3, %v138_v45 }
  0x46   :  { %v113_v56 = vclz %v281_v54  ;;  %v212_v60 = vshll.u32 %v459_v57, 30  ;;  %v235_v44 = vsub.s32 4, %v459_v57 }
  0x47   :  { %vm144_vm2 = vcmp.eq.s32.totalorder %v139_v49, 2  ;;  %vm141_vm3 = vcmp.eq.s32.totalorder %v139_v49, 0  ;;  %vm140_vm4 = vcmp.lt.s32.totalorder %v139_v49, 2 }
  0x48   :  { %v282_v59 = vadd.s32 4294967294, %v113_v56  ;;  %v213_v63 = vsub.s32 %v209_v53, %v212_v60  ;;  %v236_v51 = vsel %vm151_vm0, %v235_v44, %v459_v57 }
  0x49   :  { %v238_v54 = vsel %vm482_vm1, 0, %v236_v51 }
  0x4a   :  { %vm283_vm12 = vcmp.lt.s32.totalorder %v282_v59, 0  ;;  %v215_v11 = vsub.s32 0, %v213_v63  ;;  %v242_v60 = vadd.s32 3, %v238_v54 }
  0x4b   :  { %v116_v62 = vsel %vm283_vm12, 0, %v282_v59 }
  0x4c   :  { %v117_v8 = vsub.s32 32, %v116_v62  ;;  %v118_v9 = vshll.u32 %v109_v50, %v116_v62  ;;  %v121_v10 = vsub.s32 4294967266, %v116_v62  ;;  %v285_v15 = vmin.u32 %v215_v11, %v213_v63 }
  0x4d   :  { %v308_v39 = vpop.eup %307  ;;  %v253_v62 = vstv %s486_s1 }
  0x4e   :  { %v119_v13 = vshrl.u32 %v101_v61, %v117_v8  ;;  %v122_v14 = vadd.s32 127, %v121_v10  ;;  %v217_v18 = vclz %v285_v15  ;;  %v38_v43 = vadd.f32 1.0, %v308_v39  ;;  %v310_v53 = vpop.eup %309 }
  0x4f   :  { %v39_v59 = vadd.f32 1.0, %v310_v53 }
  0x50   :  { %v120_v16 = vor.u32 %v119_v13, %v118_v9  ;;  %v123_v17 = vshll.u32 %v122_v14, 23  ;;  %v286_v5 = vadd.s32 4294967294, %v217_v18  ;;  %v243_v9 = vand.u32 3, %v242_v60 }
  0x52   :  { %v124_v19 = vor.u32 4788187, %v123_v17  ;;  %v127_v20 = vcvt.s32.f32 %v120_v16  ;;  %vm287_vm13 = vcmp.lt.s32.totalorder %v286_v5, 0  ;;  %vm248_vm6 = vcmp.eq.s32.totalorder %v243_v9, 2 }
  0x53   :  { %v220_v28 = vsel %vm287_vm13, 0, %v286_v5  ;;  %vm245_vm7 = vcmp.eq.s32.totalorder %v243_v9, 0  ;;  %vm244_vm8 = vcmp.lt.s32.totalorder %v243_v9, 2 }
  0x54   :  { %v125_v7 = vand.u32 2147483647, %v124_v19  ;;  %v221_v23 = vsub.s32 32, %v220_v28  ;;  %v222_v25 = vshll.u32 %v213_v63, %v220_v28  ;;  %v225_v27 = vsub.s32 4294967266, %v220_v28 }
  0x56   :  { %v128_v24 = vmul.f32 %v127_v20, %v125_v7  ;;  %v223_v31 = vshrl.u32 %v205_v22, %v221_v23  ;;  %v226_v33 = vadd.s32 127, %v225_v27 }
  0x58   :  { %v129_v32 = vxor.u32 2147483648, %v128_v24  ;;  %v224_v38 = vor.u32 %v223_v31, %v222_v25  ;;  %v227_v34 = vshll.u32 %v226_v33, 23 }
  0x5a   :  { %v130_v35 = vsel %vm47_vm14, %v129_v32, %v128_v24  ;;  %v228_v40 = vor.u32 4788187, %v227_v34  ;;  %v231_v6 = vcvt.s32.f32 %v224_v38 }
  0x5b   :  { %v133_v37 = vsel %vm469_vm15, %v417_v3, %v130_v35 }
  0x5c   :  { %311 = vcosq.f32 %v133_v37  ;;  %v229_v42 = vand.u32 2147483647, %v228_v40 }
  0x5d   :  { %313 = vsinq.f32 %v133_v37 }
  0x5e   :  { %v232_v46 = vmul.f32 %v231_v6, %v229_v42  ;;  %315 = vrcp.f32 %v38_v43 }
  0x60   :  { %v233_v48 = vxor.u32 2147483648, %v232_v46 }
  0x62   :  { %v234_v50 = vsel %vm151_vm0, %v233_v48, %v232_v46 }
  0x63   :  { %v237_v52 = vsel %vm482_vm1, %v420_v4, %v234_v50 }
  0x64   :  { %317 = vcosq.f32 %v237_v52 }
  0x65   :  { %319 = vsinq.f32 %v237_v52 }
  0x66   :  { %321 = vrcp.f32 %v39_v59 }
  0x69   :  { %v312_v12 = vpop.eup %311 }
  0x6a   :  { %v314_v55 = vpop.eup %313  ;;  %v145_v56 = vxor.u32 2147483648, %v312_v12 }
  0x6b   :  { %v142_v58 = vxor.u32 2147483648, %v314_v55  ;;  %v316_v10 = vpop.eup %315 }
  0x6c   :  { %v146_v57 = vsel %vm144_vm2, %v145_v56, %v314_v55 }
  0x6d   :  { %v143_v61 = vsel %vm141_vm3, %v312_v12, %v142_v58 }
  0x6e   :  { %v147_v63 = vsel %vm140_vm4, %v143_v61, %v146_v57 }
  0x6f   :  { %v148_v2 = vsel %vm137_vm5, nan, %v147_v63 }
  0x70   :  { %v254_v8 = vmul.f32 %v253_v62, %v148_v2 }
  0x71   :  { %v318_v13 = vpop.eup %317 }
  0x72   :  { %v256_v11 = vadd.f32 %v254_v8, %v412_v0  ;;  %v320_v15 = vpop.eup %319  ;;  %v249_v16 = vxor.u32 2147483648, %v318_v13 }
  0x73   :  { %v246_v3 = vxor.u32 2147483648, %v320_v15  ;;  %v322_v5 = vpop.eup %321 }
  0x74   :  { %v258_v14 = vmul.f32 %v316_v10, %v256_v11  ;;  %v250_v17 = vsel %vm248_vm6, %v249_v16, %v320_v15 }
  0x75   :  { %v247_v18 = vsel %vm245_vm7, %v318_v13, %v246_v3 }
  0x76   :  { %260 = vst [vmem:[#allocation7] sm:$0xff] %v258_v14  ;;  %v251_v19 = vsel %vm244_vm8, %v247_v18, %v250_v17 }
  0x77   :  { %v252_v20 = vsel %vm241_vm9, nan, %v251_v19 }
  0x78   :  { %v255_v21 = vmul.f32 %v253_v62, %v252_v20 }
  0x7a   :  { %v257_v0 = vadd.f32 %v255_v21, %v414_v1 }
  0x7c   :  { %v259_v7 = vmul.f32 %v322_v5, %v257_v0 }
  0x7e   :  { %261 = vst [vmem:[#allocation7 + $0x8] sm:$0xff] %v259_v7 }
  0x7f   :  { %362 = shalt.err (!%p359_p9)
}
  0x80   :  { %273 = dma.vmem_to_hbm [thread:$0]  %s268_s20, 256, %s507_s2, [#allocation6], %s379_s15, %s379_s15, %s380_s16  }
  0x81   :  { %375 = dma.done.wait [#allocation6], 256  }
  0x82   :  { %376 = vsyncadd [#allocation6], 4294967040 }
  0x83   :  { %277 = vsyncpa [#allocation5], 1 }
  0x84   :  { %278 = vsyncpa [#allocation6], 1 }

</bundles_post_ra>
